<compile_context>
chip_gen: v6e
topology: v6e:2x2x1
jax: 0.10.0
libtpu: 0.0.40
codegen_flags: <defaults>
</compile_context>

<pallas_src>
import functools

import jax
import jax.numpy as jnp
from jax.experimental import pallas as pl
from jax.experimental.pallas import tpu as pltpu


# ---------------- Pallas kernels ----------------

def conv1_matmul_kernel(p_ref, w_ref, o_ref):
    # o = P @ W1   (im2col'd conv1; raw pre-ReLU output == identity2 source)
    o_ref[...] = jnp.dot(
        p_ref[...], w_ref[...], preferred_element_type=jnp.float32
    ).astype(o_ref.dtype)


def conv23_fused_kernel(ap_ref, w_ref, o_ref, *, oh, ow):
    # ap_ref: (1, oh+2, ow+2, cin) bf16 -- zero-padded pre-ReLU conv1 output (one image)
    # w_ref : (9*cin, 64) bf16        -- channel-concat [W2 | W3], resident across grid
    # o_ref : (1, 96, oh*ow) f32      -- channel-major (NCHW) output tile
    cin = ap_ref.shape[-1]
    # Upcast to f32 for the slice/reshape/concat relayouts (most robust lowering
    # path); values stay exactly representable and the MXU still gets bf16 below.
    ap = ap_ref[0].astype(jnp.float32)                       # (oh+2, ow+2, cin)
    r = jnp.maximum(ap, 0.0)                                  # fused ReLU (halo zeros stay zero)
    # In-kernel 3x3 im2col: nine shifted windows concatenated along K.
    taps = [r[dy:dy + oh, dx:dx + ow, :].reshape(oh * ow, cin)
            for dy in range(3) for dx in range(3)]
    p = jnp.concatenate(taps, axis=-1).astype(jnp.bfloat16)   # (oh*ow, 9*cin)
    # Single resident-weight matmul for conv2 and conv3 together.
    y = jnp.dot(p, w_ref[...], preferred_element_type=jnp.float32)   # (oh*ow, 64)
    # identity2 == pre-ReLU centre tap (raw conv1 output) -- no extra HBM stream.
    ident = ap[1:1 + oh, 1:1 + ow, :].reshape(oh * ow, cin)           # (oh*ow, cin)
    # Fused channel concat + NHWC->NCHW transpose: write a channel-major tile.
    o_ref[0] = jnp.concatenate([y, ident], axis=-1).T.astype(o_ref.dtype)  # (96, oh*ow)


# ---------------- wrappers (XLA glue) ----------------

def _round_up(x, m):
    return (x + m - 1) // m * m


def _im2col_nhwc(zp, kh, kw, stride, oh, ow):
    # zp: (N, Hp, Wp, C) zero-padded NHWC input -> patches (N*OH*OW, KH*KW*C)
    n, _, _, c = zp.shape
    cols = []
    for i in range(kh):
        for j in range(kw):
            cols.append(zp[:, i:i + stride * oh:stride, j:j + stride * ow:stride, :])
    cols = jnp.stack(cols, axis=3)              # (N, OH, OW, KH*KW, C)
    return cols.reshape(n * oh * ow, kh * kw * c)


def _w_to_matmul(w):
    # PyTorch OIHW (Cout, Cin, KH, KW) -> (KH*KW*Cin, Cout); matches _im2col_nhwc K ordering
    cout, cin, kh, kw = w.shape
    return jnp.transpose(w, (2, 3, 1, 0)).reshape(kh * kw * cin, cout)


def test_model5_forward(x, w1, w2, w3, *, tile_m=1024):
    """x: (N, 3, H, W) f32; w1: (32,3,7,7); w2, w3: (32,32,3,3). Returns NCHW (N, 96, H/2, W/2)."""
    n, _, h, w = x.shape
    cout1 = w1.shape[0]
    cout23 = w2.shape[0] + w3.shape[0]
    kh1, kw1 = w1.shape[2], w1.shape[3]
    s1, p1 = 2, 3
    oh = (h + 2 * p1 - kh1) // s1 + 1
    ow = (w + 2 * p1 - kw1) // s1 + 1
    m = n * oh * ow

    # Keep >= 2 grid steps even at toy sizes so v7x's two TensorCores both get work.
    half = _round_up((m + 1) // 2, 8)
    tm = max(8, min(tile_m, half))
    m_pad = _round_up(m, tm)

    # ---- stage 1: conv1 as im2col + M-gridded Pallas matmul (bf16 streams, f32 acc) ----
    # TODO(synk): stretch goal -- fuse conv1 into the stage-2 kernel (halo DMA over x)
    #             so patches1 and the a2d round-trip never hit HBM.
    x_nhwc = jnp.transpose(x, (0, 2, 3, 1))
    xp = jnp.pad(x_nhwc, ((0, 0), (p1, p1), (p1, p1), (0, 0)))
    patches1 = _im2col_nhwc(xp, kh1, kw1, s1, oh, ow).astype(jnp.bfloat16)  # (M, 147)
    patches1 = jnp.pad(patches1, ((0, m_pad - m), (0, 0)))
    w1m = _w_to_matmul(w1).astype(jnp.bfloat16)                             # (147, 32)
    k1 = w1m.shape[0]

    a2d = pl.pallas_call(
        conv1_matmul_kernel,
        out_shape=jax.ShapeDtypeStruct((m_pad, cout1), jnp.bfloat16),
        grid=(m_pad // tm,),
        in_specs=[
            pl.BlockSpec((tm, k1), lambda i: (i, 0)),
            pl.BlockSpec((k1, cout1), lambda i: (0, 0)),        # weight resident
        ],
        out_specs=pl.BlockSpec((tm, cout1), lambda i: (i, 0)),
        compiler_params=pltpu.CompilerParams(
            dimension_semantics=("parallel",)),
    )(patches1, w1m)

    # Raw (pre-ReLU) conv1 output in NHWC + 1px zero halo; this is the ONLY `a`
    # stream stage 2 reads ([:m] is a no-op view when m_pad == m, as in the demo).
    a_nhwc = a2d[:m].reshape(n, oh, ow, cout1)
    ap = jnp.pad(a_nhwc, ((0, 0), (1, 1), (1, 1), (0, 0)))       # (N, OH+2, OW+2, 32) bf16

    wcat = jnp.concatenate([_w_to_matmul(w2), _w_to_matmul(w3)],
                           axis=1).astype(jnp.bfloat16)          # (288, 64)
    k2 = wcat.shape[0]
    cout_total = cout23 + cout1                                  # 96

    # ---- stage 2: in-kernel im2col + fused [conv2|conv3] matmul + ReLU + concat +
    #               channel-major (NCHW) store, gridded over batch ----
    # TODO(synk): for very large OH*OW, tile over row blocks with a 1-row halo
    #             (manual pltpu.make_async_copy) to bound VMEM instead of one image/step.
    out3 = pl.pallas_call(
        functools.partial(conv23_fused_kernel, oh=oh, ow=ow),
        out_shape=jax.ShapeDtypeStruct((n, cout_total, oh * ow), jnp.float32),
        grid=(n,),
        in_specs=[
            pl.BlockSpec((1, oh + 2, ow + 2, cout1), lambda b: (b, 0, 0, 0)),
            pl.BlockSpec((k2, cout23), lambda b: (0, 0)),        # weight resident
        ],
        out_specs=pl.BlockSpec((1, cout_total, oh * ow), lambda b: (b, 0, 0)),
        compiler_params=pltpu.CompilerParams(
            dimension_semantics=("parallel",)),
    )(ap, wcat)

    # Channel-major rows already match NCHW: only a free reshape remains.
    return out3.reshape(n, cout_total, oh, ow)


# ---------------- main ----------------

if __name__ == "__main__":
    key = jax.random.PRNGKey(0)
    kx, kw1, kw2, kw3 = jax.random.split(key, 4)

    N, C, H, W = 2, 3, 16, 16
    x = jax.random.normal(kx, (N, C, H, W), dtype=jnp.float32)
    w1 = 0.05 * jax.random.normal(kw1, (32, 3, 7, 7), dtype=jnp.float32)
    w2 = 0.05 * jax.random.normal(kw2, (32, 32, 3, 3), dtype=jnp.float32)
    w3 = 0.05 * jax.random.normal(kw3, (32, 32, 3, 3), dtype=jnp.float32)

    out = jax.jit(test_model5_forward)(x, w1, w2, w3)
    out = jax.block_until_ready(out)
    assert out.shape == (N, 96, 8, 8), out.shape

    # Reference check against f32 XLA convs (NCHW / OIHW). The kernel uses bf16
    # matmul streams with f32 accumulation, so compare at a bf16-appropriate tolerance.
    dn = ("NCHW", "OIHW", "NCHW")
    a_ref = jax.lax.conv_general_dilated(x, w1, (2, 2), [(3, 3), (3, 3)],
                                         dimension_numbers=dn)
    r_ref = jnp.maximum(a_ref, 0.0)
    b_ref = jax.lax.conv_general_dilated(r_ref, w2, (1, 1), [(1, 1), (1, 1)],
                                         dimension_numbers=dn)
    c_ref = jax.lax.conv_general_dilated(r_ref, w3, (1, 1), [(1, 1), (1, 1)],
                                         dimension_numbers=dn)
    ref = jnp.concatenate([b_ref, c_ref, a_ref], axis=1)
    max_err = float(jnp.max(jnp.abs(out - ref)))
    assert jnp.allclose(out, ref, rtol=2e-2, atol=2e-2), max_err

    print("KERNEL_OK")
</pallas_src>

<mosaic_0001>
module attributes {stable_mosaic.version = 11 : i64} {
  func.func @conv1_matmul_kernel(%arg0: i32, %arg1: memref<64x147xbf16, #tpu.memory_space<vmem>>, %arg2: memref<147x32xbf16, #tpu.memory_space<vmem>>, %arg3: memref<64x32xbf16, #tpu.memory_space<vmem>>) attributes {dimension_semantics = [#tpu.dimension_semantics<parallel>], iteration_bounds = array<i64: 2>, scalar_prefetch = 0 : i64, scratch_operands = 0 : i64, tpu.core_type = #tpu.core_type<tc>, window_params = [{transform_indices = @transform_0, window_bounds = array<i64: 64, 147>}, {pipeline_mode = #tpu.pipeline_mode<synchronous>, transform_indices = @transform_1, window_bounds = array<i64: 147, 32>}, {transform_indices = @transform_2, window_bounds = array<i64: 64, 32>}]} {
    %c0 = arith.constant 0 : index
    %c0_0 = arith.constant 0 : index
    %0 = vector.load %arg1[%c0, %c0_0] : memref<64x147xbf16, #tpu.memory_space<vmem>>, vector<64x147xbf16>
    %c0_1 = arith.constant 0 : index
    %c0_2 = arith.constant 0 : index
    %1 = vector.load %arg2[%c0_1, %c0_2] : memref<147x32xbf16, #tpu.memory_space<vmem>>, vector<147x32xbf16>
    %cst = arith.constant dense<0.000000e+00> : vector<64x32xf32>
    %2 = tpu.matmul %0, %1, %cst {dimension_numbers = #tpu.dot_dimension_numbers<[1], [0], [0], [1], [0, 0, 1, 1], [], []>} : vector<64x147xbf16>, vector<147x32xbf16>, vector<64x32xf32> -> vector<64x32xf32>
    %3 = arith.truncf %2 : vector<64x32xf32> to vector<64x32xbf16>
    %c0_3 = arith.constant 0 : index
    %c0_4 = arith.constant 0 : index
    %4 = vector.load %arg3[%c0_3, %c0_4] : memref<64x32xbf16, #tpu.memory_space<vmem>>, vector<64x32xbf16>
    tpu.vector_store %arg3[%c0_3, %c0_4], %3 {strides = array<i32>} : memref<64x32xbf16, #tpu.memory_space<vmem>>, vector<64x32xbf16>,
    return
  }
  func.func @transform_0(%arg0: i32) -> (i32, i32) {
    %c0_i32 = arith.constant 0 : i32
    %c0_i32_0 = arith.constant 0 : i32
    return %arg0, %c0_i32 : i32, i32
  }
  func.func @transform_1(%arg0: i32) -> (i32, i32) {
    %c0_i32 = arith.constant 0 : i32
    %c0_i32_0 = arith.constant 0 : i32
    %c0_i32_1 = arith.constant 0 : i32
    return %c0_i32, %c0_i32_0 : i32, i32
  }
  func.func @transform_2(%arg0: i32) -> (i32, i32) {
    %c0_i32 = arith.constant 0 : i32
    %c0_i32_0 = arith.constant 0 : i32
    return %arg0, %c0_i32 : i32, i32
  }
}

module attributes {stable_mosaic.version = 11 : i64} {
  func.func @conv23_fused_kernel(%arg0: i32, %arg1: memref<1x10x10x32xbf16, #tpu.memory_space<vmem>>, %arg2: memref<288x64xbf16, #tpu.memory_space<vmem>>, %arg3: memref<1x96x64xf32, #tpu.memory_space<vmem>>) attributes {dimension_semantics = [#tpu.dimension_semantics<parallel>], iteration_bounds = array<i64: 2>, scalar_prefetch = 0 : i64, scratch_operands = 0 : i64, tpu.core_type = #tpu.core_type<tc>, window_params = [{transform_indices = @transform_0, window_bounds = array<i64: 1, 10, 10, 32>}, {pipeline_mode = #tpu.pipeline_mode<synchronous>, transform_indices = @transform_1, window_bounds = array<i64: 288, 64>}, {transform_indices = @transform_2, window_bounds = array<i64: 1, 96, 64>}]} {
    %c0 = arith.constant 0 : index
    %c0_0 = arith.constant 0 : index
    %c0_1 = arith.constant 0 : index
    %c0_2 = arith.constant 0 : index
    %0 = vector.load %arg1[%c0, %c0_0, %c0_1, %c0_2] : memref<1x10x10x32xbf16, #tpu.memory_space<vmem>>, vector<1x10x10x32xbf16>
    %1 = vector.shape_cast %0 : vector<1x10x10x32xbf16> to vector<10x10x32xbf16>
    %2 = arith.extf %1 : vector<10x10x32xbf16> to vector<10x10x32xf32>
    %cst = arith.constant 0.000000e+00 : f32
    %3 = vector.broadcast %cst : f32 to vector<10x10x32xf32>
    %4 = arith.maximumf %2, %3 : vector<10x10x32xf32>
    %5 = vector.extract_strided_slice %4 {offsets = [0, 0, 0], sizes = [8, 8, 32], strides = [1, 1, 1]} : vector<10x10x32xf32> to vector<8x8x32xf32>
    %6 = vector.shape_cast %5 : vector<8x8x32xf32> to vector<64x32xf32>
    %7 = vector.extract_strided_slice %4 {offsets = [0, 1, 0], sizes = [8, 8, 32], strides = [1, 1, 1]} : vector<10x10x32xf32> to vector<8x8x32xf32>
    %8 = vector.shape_cast %7 : vector<8x8x32xf32> to vector<64x32xf32>
    %9 = vector.extract_strided_slice %4 {offsets = [0, 2, 0], sizes = [8, 8, 32], strides = [1, 1, 1]} : vector<10x10x32xf32> to vector<8x8x32xf32>
    %10 = vector.shape_cast %9 : vector<8x8x32xf32> to vector<64x32xf32>
    %11 = vector.extract_strided_slice %4 {offsets = [1, 0, 0], sizes = [8, 8, 32], strides = [1, 1, 1]} : vector<10x10x32xf32> to vector<8x8x32xf32>
    %12 = vector.shape_cast %11 : vector<8x8x32xf32> to vector<64x32xf32>
    %13 = vector.extract_strided_slice %4 {offsets = [1, 1, 0], sizes = [8, 8, 32], strides = [1, 1, 1]} : vector<10x10x32xf32> to vector<8x8x32xf32>
    %14 = vector.shape_cast %13 : vector<8x8x32xf32> to vector<64x32xf32>
    %15 = vector.extract_strided_slice %4 {offsets = [1, 2, 0], sizes = [8, 8, 32], strides = [1, 1, 1]} : vector<10x10x32xf32> to vector<8x8x32xf32>
    %16 = vector.shape_cast %15 : vector<8x8x32xf32> to vector<64x32xf32>
    %17 = vector.extract_strided_slice %4 {offsets = [2, 0, 0], sizes = [8, 8, 32], strides = [1, 1, 1]} : vector<10x10x32xf32> to vector<8x8x32xf32>
    %18 = vector.shape_cast %17 : vector<8x8x32xf32> to vector<64x32xf32>
    %19 = vector.extract_strided_slice %4 {offsets = [2, 1, 0], sizes = [8, 8, 32], strides = [1, 1, 1]} : vector<10x10x32xf32> to vector<8x8x32xf32>
    %20 = vector.shape_cast %19 : vector<8x8x32xf32> to vector<64x32xf32>
    %21 = vector.extract_strided_slice %4 {offsets = [2, 2, 0], sizes = [8, 8, 32], strides = [1, 1, 1]} : vector<10x10x32xf32> to vector<8x8x32xf32>
    %22 = vector.shape_cast %21 : vector<8x8x32xf32> to vector<64x32xf32>
    %23 = tpu.concatenate %6, %8, %10, %12, %14, %16, %18, %20, %22 in 1 : vector<64x32xf32>, vector<64x32xf32>, vector<64x32xf32>, vector<64x32xf32>, vector<64x32xf32>, vector<64x32xf32>, vector<64x32xf32>, vector<64x32xf32>, vector<64x32xf32> -> vector<64x288xf32>
    %24 = arith.truncf %23 : vector<64x288xf32> to vector<64x288xbf16>
    %c0_3 = arith.constant 0 : index
    %c0_4 = arith.constant 0 : index
    %25 = vector.load %arg2[%c0_3, %c0_4] : memref<288x64xbf16, #tpu.memory_space<vmem>>, vector<288x64xbf16>
    %cst_5 = arith.constant dense<0.000000e+00> : vector<64x64xf32>
    %26 = tpu.matmul %24, %25, %cst_5 {dimension_numbers = #tpu.dot_dimension_numbers<[1], [0], [0], [1], [0, 0, 1, 1], [], []>} : vector<64x288xbf16>, vector<288x64xbf16>, vector<64x64xf32> -> vector<64x64xf32>
    %27 = vector.extract_strided_slice %2 {offsets = [1, 1, 0], sizes = [8, 8, 32], strides = [1, 1, 1]} : vector<10x10x32xf32> to vector<8x8x32xf32>
    %28 = vector.shape_cast %27 : vector<8x8x32xf32> to vector<64x32xf32>
    %29 = tpu.concatenate %26, %28 in 1 : vector<64x64xf32>, vector<64x32xf32> -> vector<64x96xf32>
    %30 = tpu.transpose %29, [1, 0] : vector<64x96xf32> -> vector<96x64xf32>
    %c0_6 = arith.constant 0 : index
    %c0_7 = arith.constant 0 : index
    %c0_8 = arith.constant 0 : index
    %31 = vector.load %arg3[%c0_6, %c0_7, %c0_8] : memref<1x96x64xf32, #tpu.memory_space<vmem>>, vector<1x96x64xf32>
    %32 = vector.shape_cast %31 : vector<1x96x64xf32> to vector<96x64xf32>
    %33 = vector.shape_cast %30 : vector<96x64xf32> to vector<1x96x64xf32>
    tpu.vector_store %arg3[%c0_6, %c0_7, %c0_8], %33 {strides = array<i32>} : memref<1x96x64xf32, #tpu.memory_space<vmem>>, vector<1x96x64xf32>,
    return
  }
  func.func @transform_0(%arg0: i32) -> (i32, i32, i32, i32) {
    %c0_i32 = arith.constant 0 : i32
    %c0_i32_0 = arith.constant 0 : i32
    %c0_i32_1 = arith.constant 0 : i32
    %c0_i32_2 = arith.constant 0 : i32
    return %arg0, %c0_i32, %c0_i32_0, %c0_i32_1 : i32, i32, i32, i32
  }
  func.func @transform_1(%arg0: i32) -> (i32, i32) {
    %c0_i32 = arith.constant 0 : i32
    %c0_i32_0 = arith.constant 0 : i32
    %c0_i32_1 = arith.constant 0 : i32
    return %c0_i32, %c0_i32_0 : i32, i32
  }
  func.func @transform_2(%arg0: i32) -> (i32, i32, i32) {
    %c0_i32 = arith.constant 0 : i32
    %c0_i32_0 = arith.constant 0 : i32
    %c0_i32_1 = arith.constant 0 : i32
    return %arg0, %c0_i32, %c0_i32_0 : i32, i32, i32
  }
}

</mosaic_0001>

<bundles_post_ra>
// kernel: test_model5_forward.2
= control target key start
LH: loop header
LB: loop body
LE: loop exit
PB: predicated region body
PF: predicated region fallthrough
CT: control target
= control target key end

     0   :  { %s581_s9 = smov 0   ;;  %s664_s0 = inlined_call_operand.vmem [shape: bf16[128,147], index: 0, kind: input, shape index: {}]   ;;  %s665_s1 = inlined_call_operand.vmem [shape: bf16[147,32], index: 1, kind: input, shape index: {}]   ;;  %s666_s2 = inlined_call_operand.vmem [shape: bf16[128,32], index: 2, kind: output, shape index: {}]  }
   0x1 LB: > { %s453_s10 = sadd.s32 4294967295, %s562_s9   ;;  %p457_p0 = scmp.ge.s32.totalorder %s562_s9, 1  ;;  %s562_s9 = sphi %s581_s9, %s12_s9  }
   0x2   : > { %p114_p1 = scmp.lt.s32.totalorder %s562_s9, 3 }
   0x4   : > { %p115_p2 = pnand %p457_p0, %p114_p1 }
   0x5   : > { %s458_s17 = sshll.u32 (!%p115_p2), %s453_s10, 3 }
   0x6   : > { %118 = sbr.rel (%p115_p2) target bundleno = 260 (0x104), region = 28  ;;  %p138_p3 = scmp.lt.s32.totalorder (!%p115_p2), %s458_s17, 15 }
   0xb   : > { %v534_v0 = vld [vmem:[%s665_s1 + $0x38] sm:$0xff]   ;;  %v564_v1 = vmov 0   ;;  %v535_v2 = vld [vmem:[%s665_s1 + $0x30] sm:$0xff]   ;;  %v536_v3 = vld [vmem:[%s665_s1 + $0x28] sm:$0xff]   ;;  %s668_s17 = smov (!%p138_p3, %s458_s17), 15  ;;  %vm271_vm0 = vcmask 154624  }
   0xc   : > { %291 = vmatprep.subr.bf16.mxu0 %v564_v1  ;;  %504 = vmatprep.subr.bf16.mxu1 %v564_v1  ;;  %v537_v4 = vld [vmem:[%s665_s1 + $0x20] sm:$0xff]   ;;  %s495_s20 = sshll.u32 %s668_s17, 3  ;;  %v538_v5 = vld [vmem:[%s665_s1 + $0x18] sm:$0xff]   ;;  %v539_v8 = vld [vmem:[%s665_s1 + $0x10] sm:$0xff]   ;;  %vm284_vm1 = vcmask 1040384   ;;  %vm285_vm2 = vcmask 1041408  }
   0xd   : > { %292 = vmatpush1.bf16.msra.mxu0 %v534_v0  ;;  %514 = vmatpush1.bf16.msra.mxu1 %v534_v0  ;;  %s607_s23 = scalar_lea.vmem %s664_s0, %s495_s20  ;;  %v540_v9 = vld [vmem:[%s665_s1 + $0x8] sm:$0xff]   ;;  %v565_v10 = vmov 65535   ;;  %v541_v12 = vld [vmem:[%s665_s1] sm:$0xff]   ;;  %s462_s8 = sshll.u32 %s668_s17, 2  ;;  %vm388_vm3 = vcmask 257024  }
   0xe   : > { %293 = vmatprep.subr.bf16.mxu0 %v564_v1  ;;  %505 = vmatprep.subr.bf16.mxu1 %v564_v1  ;;  %v546_v6 = vld [vmem:[%s607_s23 + $0x4] ss:$8 sps:$4 sm:$0xff]   ;;  %v286_v11 = vsel %vm284_vm1, 4294967295, %v565_v10  ;;  %v542_v13 = vld [vmem:[%s665_s1 + $0x48] ss:$0 sps:$4 sm:$0x33]   ;;  %s643_s12 = scalar_lea.vmem %s666_s2, %s462_s8 }
   0xf   : > { %v549_v7 = vld [vmem:[%s607_s23 + $0x24] ss:$8 sps:$4 sm:$0xff]   ;;  %481 = vmatprep.mubr.msk.bf16.mxu0 %vm271_vm0, %v546_v6  ;;  %v287_v14 = vsel %vm285_vm2, %v286_v11, 0  ;;  %v544_v17 = vld [vmem:[%s607_s23] ss:$8 sps:$4 sm:$0xff]  }
  0x10   : > { %483 = vmatprep.mubr.msk.bf16.mxu1 %vm271_vm0, %v549_v7  ;;  %v289_v15 = vand.u32 %v542_v13, %v287_v14  ;;  %v543_v16 = vld [vmem:[%s665_s1 + $0x40] sm:$0xff]   ;;  %v550_v19 = vld [vmem:[%s607_s23 + $0x14] ss:$8 sps:$4 sm:$0xff]   ;;  %v554_v21 = vld [vmem:[%s607_s23 + $0x10] ss:$8 sps:$4 sm:$0xff]  }
  0x11   : > { %294 = vmatpush1.bf16.msra.mxu0 %v535_v2  ;;  %515 = vmatpush1.bf16.msra.mxu1 %v535_v2  ;;  %v547_v18 = vld [vmem:[%s607_s23 + $0x20] ss:$8 sps:$4 sm:$0xff]   ;;  %v552_v20 = vld [vmem:[%s607_s23 + $0x34] ss:$8 sps:$4 sm:$0xff]   ;;  %v555_v22 = vld [vmem:[%s607_s23 + $0x30] ss:$8 sps:$4 sm:$0xff]  }
  0x12   : > { %295 = vmatprep.subr.bf16.mxu0 %v564_v1  ;;  %506 = vmatprep.subr.bf16.mxu1 %v564_v1 }
  0x15   : > { %296 = vmatpush1.bf16.msra.mxu0 %v536_v3  ;;  %516 = vmatpush1.bf16.msra.mxu1 %v536_v3 }
  0x16   : > { %297 = vmatprep.subr.bf16.mxu0 %v564_v1  ;;  %507 = vmatprep.subr.bf16.mxu1 %v564_v1 }
  0x19   : > { %298 = vmatpush1.bf16.msra.mxu0 %v537_v4  ;;  %517 = vmatpush1.bf16.msra.mxu1 %v537_v4 }
  0x1a   : > { %299 = vmatprep.subr.bf16.mxu0 %v564_v1  ;;  %508 = vmatprep.subr.bf16.mxu1 %v564_v1 }
  0x1d   : > { %300 = vmatpush1.bf16.msra.mxu0 %v538_v5  ;;  %518 = vmatpush1.bf16.msra.mxu1 %v538_v5 }
  0x1e   : > { %301 = vmatprep.subr.bf16.mxu0 %v564_v1  ;;  %509 = vmatprep.subr.bf16.mxu1 %v564_v1 }
  0x21   : > { %302 = vmatpush1.bf16.msra.mxu0 %v539_v8  ;;  %519 = vmatpush1.bf16.msra.mxu1 %v539_v8 }
  0x22   : > { %303 = vmatprep.subr.bf16.mxu0 %v564_v1  ;;  %510 = vmatprep.subr.bf16.mxu1 %v564_v1 }
  0x25   : > { %304 = vmatpush1.bf16.msra.mxu0 %v540_v9  ;;  %520 = vmatpush1.bf16.msra.mxu1 %v540_v9 }
  0x26   : > { %305 = vmatprep.subr.bf16.mxu0 %v564_v1  ;;  %511 = vmatprep.subr.bf16.mxu1 %v564_v1 }
  0x29   : > { %306 = vmatpush1.bf16.msra.mxu0 %v541_v12  ;;  %521 = vmatpush1.bf16.msra.mxu1 %v541_v12 }
  0x2a   : > { %319 = vmatprep.subr.bf16.mxu0 %v564_v1  ;;  %512 = vmatprep.subr.bf16.mxu1 %v564_v1 }
  0x2d   : > { %320 = vmatpush2.bf16.msra.mxu0 %v289_v15  ;;  %522 = vmatpush2.bf16.msra.mxu1 %v289_v15 }
  0x2e   : > { %321 = vmatprep.subr.bf16.mxu0 %v564_v1  ;;  %513 = vmatprep.subr.bf16.mxu1 %v564_v1 }
  0x31   : > { %322 = vmatpush2.bf16.msra.mxu0 %v543_v16  ;;  %523 = vmatpush2.bf16.msra.mxu1 %v543_v16 }
  0x34   : > { %324 = vmatmul.mubr.bf16.vlgmr.msra.gmra.mxu0 %v544_v17  ;;  %340 = vmatmul.mubr.bf16.vlgmr.msra.gmra.mxu1 %v547_v18 }
  0x35   : > { %482 = vmatprep.mubr.msk.bf16.mxu0 %vm271_vm0, %v550_v19  ;;  %484 = vmatprep.mubr.msk.bf16.mxu1 %vm271_vm0, %v552_v20 }
  0x3c   : > { %332 = vmatmul.mubr.bf16.gmra.mxu0 %v554_v21  ;;  %348 = vmatmul.mubr.bf16.gmra.mxu1 %v555_v22 }
  0xf4   : > { %v325_v23 = vpop.f32.mrf.mxu0  ;;  %v341_v24 = vpop.f32.mrf.mxu1 }
  0xf5   : > { %v496_v25 = vpack.c.bf16 %v325_v23, %v325_v23  ;;  %v500_v26 = vpack.c.bf16 %v341_v24, %v341_v24 }
  0xf6   : > { %v327_v27 = vpop.f32.mrf.mxu0  ;;  %v343_v28 = vpop.f32.mrf.mxu1 }
  0xf7   : > { %389 = vst.msk [vmem:[%s643_s12] sm:$0xf] %vm388_vm3, %v496_v25  ;;  %393 = vst.msk [vmem:[%s643_s12 + $0x10] sm:$0xf] %vm388_vm3, %v500_v26 }
  0xf8   : > { %v328_v29 = vpop.f32.mrf.mxu0  ;;  %v344_v30 = vpop.f32.mrf.mxu1 }
  0xf9   : > { %v497_v31 = vpack.c.bf16 %v328_v29, %v328_v29  ;;  %v501_v32 = vpack.c.bf16 %v344_v30, %v344_v30 }
  0xfa   : > { %v330_v33 = vpop.f32.mrf.mxu0  ;;  %v346_v34 = vpop.f32.mrf.mxu1 }
  0xfb   : > { %390 = vst.msk [vmem:[%s643_s12 + $0x4] sm:$0xf] %vm388_vm3, %v497_v31  ;;  %394 = vst.msk [vmem:[%s643_s12 + $0x14] sm:$0xf] %vm388_vm3, %v501_v32 }
  0xfc   : > { %v333_v35 = vpop.f32.mrf.mxu0  ;;  %v349_v36 = vpop.f32.mrf.mxu1 }
  0xfd   : > { %v498_v37 = vpack.c.bf16 %v333_v35, %v333_v35  ;;  %v502_v38 = vpack.c.bf16 %v349_v36, %v349_v36 }
  0xfe   : > { %v335_v39 = vpop.f32.mrf.mxu0  ;;  %v351_v40 = vpop.f32.mrf.mxu1 }
  0xff   : > { %391 = vst.msk [vmem:[%s643_s12 + $0x8] sm:$0xf] %vm388_vm3, %v498_v37  ;;  %395 = vst.msk [vmem:[%s643_s12 + $0x18] sm:$0xf] %vm388_vm3, %v502_v38 }
 0x100   : > { %v336_v41 = vpop.f32.mrf.mxu0  ;;  %v352_v42 = vpop.f32.mrf.mxu1 }
 0x101   : > { %v499_v43 = vpack.c.bf16 %v336_v41, %v336_v41  ;;  %v503_v44 = vpack.c.bf16 %v352_v42, %v352_v42 }
 0x102   : > { %v338_v45 = vpop.f32.mrf.mxu0  ;;  %v354_v46 = vpop.f32.mrf.mxu1 }
 0x103   : > { %392 = vst.msk [vmem:[%s643_s12 + $0xc] sm:$0xf] %vm388_vm3, %v499_v43  ;;  %396 = vst.msk [vmem:[%s643_s12 + $0x1c] sm:$0xf] %vm388_vm3, %v503_v44 }
 0x104 PF: > { %s12_s9 = sadd.s32 1, %s562_s9  }
 0x105   : > { %p9_p4 = scmp.ge.s32.totalorder %s12_s9, 4  }
 0x107   :  { %11 = sbr.rel (!%p9_p4) target bundleno = 1 (0x1), region = 58 }

// kernel: test_model5_forward.3
= control target key start
LH: loop header
LB: loop body
LE: loop exit
PB: predicated region body
PF: predicated region fallthrough
CT: control target
= control target key end

     0   :  { %s1250_s9 = smov 0   ;;  %s1751_s0 = inlined_call_operand.vmem [shape: bf16[2,10,10,32], index: 0, kind: input, shape index: {}]   ;;  %s1752_s1 = inlined_call_operand.vmem [shape: bf16[288,64], index: 1, kind: input, shape index: {}]   ;;  %s1753_s2 = inlined_call_operand.vmem [shape: f32[2,96,64], index: 2, kind: output, shape index: {}]  }
   0x1 LB: > { %s967_s10 = sadd.s32 4294967295, %s1230_s9   ;;  %p971_p0 = scmp.ge.s32.totalorder %s1230_s9, 1  ;;  %s1230_s9 = sphi %s1250_s9, %s12_s9  }
   0x2   : > { %p112_p1 = scmp.lt.s32.totalorder %s1230_s9, 3 }
   0x4   : > { %p113_p2 = pnand %p971_p0, %p112_p1 }
   0x5   : > { %p134_p3 = scmp.lt.s32.totalorder (!%p113_p2), %s967_s10, 1  ;;  %s1232_s29 = smov (!%p113_p2), 64  }
   0x6   : > { %116 = sbr.rel (%p113_p2) target bundleno = 548 (0x224), region = 28  ;;  %s1233_s6 = smov (!%p113_p2), 32  }
   0x7   : > { %s1234_s7 = smov (!%p113_p2), 96  }
   0xb   : > { %v1206_v0 = vld [vmem:[%s1752_s1 + $0x78] sm:$0xff]   ;;  %s1761_s10 = smov (!%p134_p3, %s967_s10), 1  ;;  %v1208_v2 = vld [vmem:[%s1752_s1 + $0x70] sm:$0xff]   ;;  %vm246_vm0 = vcmask 1045504   ;;  %v1210_v4 = vld [vmem:[%s1752_s1 + $0x68] sm:$0xff]   ;;  %vm221_vm1 = vcmask 1046528  }
   0xc   : > { %v1207_v1 = vld [vmem:[%s1752_s1 + $0x38] sm:$0xff]   ;;  %998 = vmatprep.subr.bf16.mxu0 %v1206_v0  ;;  %1056 = vmatprep.subr.bf16.mxu1 %v1206_v0  ;;  %s1072_s17 = smul.u32 80, %s1761_s10  ;;  %v1209_v3 = vld [vmem:[%s1752_s1 + $0x30] sm:$0xff]   ;;  %v1211_v5 = vld [vmem:[%s1752_s1 + $0x28] sm:$0xff]   ;;  %vm447_vm2 = vcmask 261120   ;;  %vm456_vm3 = vcmask 523264  }
   0xd   : > { %999 = vmatpush3.bf16.msra.mxu0 %v1207_v1  ;;  %1064 = vmatpush3.bf16.msra.mxu1 %v1207_v1  ;;  %v1212_v33 = vld [vmem:[%s1752_s1 + $0x60] sm:$0xff]   ;;  %v1214_v59 = vld [vmem:[%s1752_s1 + $0x58] sm:$0xff]   ;;  %vm465_vm4 = vcmask 785408   ;;  %s1073_s28 = smul.u32 96, %s1761_s10 }
   0xe   : > { %1000 = vmatprep.subr.bf16.mxu0 %v1208_v2  ;;  %1057 = vmatprep.subr.bf16.mxu1 %v1208_v2  ;;  %s1279_s24 = scalar_lea.vmem %s1751_s0, %s1072_s17  ;;  %v1213_v54 = vld [vmem:[%s1752_s1 + $0x20] sm:$0xff]   ;;  %v1215_v0 = vld [vmem:[%s1752_s1 + $0x18] sm:$0xff]  }
   0xf   : > { %v1285_v6 = vld [vmem:[%s1279_s24 + $0x10] ss:$8 sps:$4 sm:$0xff]   ;;  %v1288_v7 = vld [vmem:[%s1279_s24] ss:$8 sps:$4 sm:$0xff]   ;;  %v1291_v8 = vld [vmem:[%s1279_s24 + $0xc] sm:$0x1]  ;;  %s143_s3 = scalar_lea.vmem %s1753_s2, %s1073_s28 }
  0x10   : > { %v169_v9 = vunpack.c.l.bf16 %v1285_v6  ;;  %v171_v10 = vunpack.c.h.bf16 %v1285_v6  ;;  %v1296_v11 = vld [vmem:[%s1279_s24 + $0x14] sm:$0x1]  ;;  %v1299_v12 = vld [vmem:[%s1279_s24 + $0x1c] sm:$0x1]  ;;  %v167_v13 = vunpack.c.h.bf16 %v1288_v7  ;;  %v168_v14 = vunpack.c.l.bf16 %v1291_v8  ;;  %v146_v15 = vld [vmem:[%s1279_s24 + $0x4] sm:$0x1] }
  0x11   : > { %1001 = vmatpush3.bf16.msra.mxu0 %v1209_v3  ;;  %1065 = vmatpush3.bf16.msra.mxu1 %v1209_v3  ;;  %v170_v16 = vunpack.c.l.bf16 %v1296_v11  ;;  %v172_v17 = vunpack.c.l.bf16 %v1299_v12  ;;  %v165_v18 = vunpack.c.l.bf16 %v1288_v7  ;;  %v166_v19 = vunpack.c.l.bf16 %v146_v15  ;;  %v1336_v32 = vld [vmem:[%s1279_s24 + $0x38] ss:$8 sps:$4 sm:$0xff]   ;;  %v1346_v38 = vld [vmem:[%s1279_s24 + $0x3c] sm:$0x1]  ;;  %v1354_v43 = vld [vmem:[%s1279_s24 + $0x44] sm:$0x1] }
  0x12   : > { %1002 = vmatprep.subr.bf16.mxu0 %v1210_v4  ;;  %1058 = vmatprep.subr.bf16.mxu1 %v1210_v4  ;;  %v1309_v20 = vmax.f32 %v169_v9, 0.0  ;;  %v1313_v21 = vmax.f32 %v171_v10, 0.0  ;;  %v1317_v22 = vmax.f32 %v167_v13, 0.0  ;;  %v188_v23 = vmax.f32 %v168_v14, 0.0  ;;  %v164_v44 = vld [vmem:[%s1279_s24 + $0x4c] sm:$0x1] }
  0x13   : > { %v1323_v24 = vmax.f32 %v170_v16, 0.0  ;;  %v1327_v25 = vmax.f32 %v172_v17, 0.0  ;;  %v1329_v26 = vmax.f32 %v165_v18, 0.0  ;;  %v186_v27 = vmax.f32 %v166_v19, 0.0  ;;  %v1365_v49 = vld [vmem:[%s1279_s24 + $0x30] ss:$24 sps:$4 sm:$0xff]  }
  0x14   : > { %v1086_v28 = vpack.i.bf16 %v1313_v21, %v1309_v20  ;;  %v250_v29 = vrot.slane %v1317_v22, 2  ;;  %v251_v30 = vrot.slane %v188_v23, 2  ;;  %v253_v31 = vrot.slane %v1309_v20, 2 }
  0x15   : > { %1003 = vmatpush3.bf16.msra.mxu0 %v1211_v5  ;;  %1066 = vmatpush3.bf16.msra.mxu1 %v1211_v5  ;;  %v254_v34 = vrot.slane %v1323_v24, 2  ;;  %v256_v35 = vrot.slane %v1313_v21, 2  ;;  %v257_v36 = vrot.slane %v1327_v25, 2  ;;  %v247_v37 = vrot.slane %v1329_v26, 2  ;;  %v1399_v5 = vld [vmem:[%s1279_s24 + $0x34] sm:$0x1] }
  0x16   : > { %1087 = vrot.lane.b32.xlu1 %v1086_v28, %s1232_s29  ;;  %v252_v39 = vsel %vm246_vm0, %v250_v29, %v251_v30  ;;  %v248_v40 = vrot.slane %v186_v27, 2  ;;  %v1091_v41 = vpack.i.bf16 %v1309_v20, %v1317_v22  ;;  %v222_v42 = vrot.slane %v1329_v26, 1  ;;  %1004 = vmatprep.subr.bf16.mxu0 %v1212_v33 }
  0x17   : > { %v1358_v45 = vsel %vm246_vm0, %v253_v31, %v254_v34  ;;  %v1361_v46 = vsel %vm246_vm0, %v256_v35, %v257_v36  ;;  %v223_v47 = vrot.slane %v186_v27, 1  ;;  %v225_v48 = vrot.slane %v1317_v22, 1  ;;  %1059 = vmatprep.subr.bf16.mxu1 %v1212_v33  ;;  %v1216_v27 = vld [vmem:[%s1752_s1 + $0x50] sm:$0xff]  }
  0x18   : > { %v1096_v51 = vpack.i.bf16 %v1358_v45, %v252_v39  ;;  %v249_v52 = vsel %vm246_vm0, %v247_v37, %v248_v40  ;;  %v226_v53 = vrot.slane %v188_v23, 1  ;;  %v1755_v57 = vunpack.c.l.bf16 %v1336_v32  ;;  %v1217_v33 = vld [vmem:[%s1752_s1 + $0x10] sm:$0xff]  }
  0x19   : > { %v1106_v55 = vpack.i.bf16 %v252_v39, %v249_v52  ;;  %v224_v56 = vsel %vm221_vm1, %v222_v42, %v223_v47  ;;  %v1754_v58 = vunpack.c.l.bf16 %v1346_v38  ;;  %v181_v61 = vunpack.c.h.bf16 %v1336_v32  ;;  %1005 = vmatpush3.bf16.msra.mxu0 %v1213_v54  ;;  %1067 = vmatpush3.bf16.msra.mxu1 %v1213_v54 }
  0x1a   : > { %1097 = vrot.lane.b32.xlu0 %v1096_v51, %s1233_s6  ;;  %1092 = vrot.lane.b32.xlu1 %v1091_v41, %s1234_s7  ;;  %v1383_v60 = vsel %vm221_vm1, %v225_v48, %v226_v53  ;;  %v182_v62 = vunpack.c.l.bf16 %v1354_v43  ;;  %v183_v63 = vunpack.c.h.bf16 %v1365_v49  ;;  %v184_v2 = vunpack.c.l.bf16 %v164_v44  ;;  %v1218_v51 = vld [vmem:[%s1752_s1 + $0x48] sm:$0xff]  }
  0x1b   : > { %v1101_v1 = vpack.i.bf16 %v1383_v60, %v224_v56  ;;  %v1394_v3 = vmax.f32 %v1755_v57, 0.0  ;;  %v200_v4 = vmax.f32 %v1754_v58, 0.0  ;;  %v1403_v15 = vmax.f32 %v181_v61, 0.0  ;;  %1006 = vmatprep.subr.bf16.mxu0 %v1214_v59  ;;  %1060 = vmatprep.subr.bf16.mxu1 %v1214_v59  ;;  %v1457_v56 = vld [vmem:[%s1279_s24 + $0x24] sm:$0x1] }
  0x1c   : > { %v1407_v18 = vmax.f32 %v182_v62, 0.0  ;;  %v1409_v19 = vmax.f32 %v183_v63, 0.0  ;;  %v228_v23 = vrot.slane %v1309_v20, 1  ;;  %v1415_v28 = vmax.f32 %v184_v2, 0.0  ;;  %v1219_v2 = vld [vmem:[%s1752_s1 + $0x8] sm:$0xff]  }
  0x1d   : > { %v268_v29 = vrot.slane %v1394_v3, 2  ;;  %v269_v30 = vrot.slane %v200_v4, 2  ;;  %v229_v31 = vrot.slane %v1323_v24, 1  ;;  %v284_v34 = vrot.slane %v1403_v15, 2  ;;  %1007 = vmatpush3.bf16.msra.mxu0 %v1215_v0  ;;  %1068 = vmatpush3.bf16.msra.mxu1 %v1215_v0 }
  0x1e   : > { %1102 = vrot.lane.b32.xlu0 %v1101_v1, %s1233_s6  ;;  %1107 = vrot.lane.b32.xlu1 %v1106_v55, %s1232_s29  ;;  %v285_v35 = vrot.slane %v1407_v18, 2  ;;  %v292_v36 = vrot.slane %v1409_v19, 2  ;;  %v231_v37 = vrot.slane %v1313_v21, 1  ;;  %v293_v24 = vrot.slane %v1415_v28, 2  ;;  %v1454_v55 = vld [vmem:[%s1279_s24 + $0x20] ss:$8 sps:$4 sm:$0xff]  }
  0x1f   : > { %v1429_v39 = vsel %vm246_vm0, %v268_v29, %v269_v30  ;;  %v1433_v40 = vsel %vm221_vm1, %v228_v23, %v229_v31  ;;  %v232_v41 = vrot.slane %v1327_v25, 1  ;;  %v177_v44 = vunpack.c.l.bf16 %v1365_v49  ;;  %1008 = vmatprep.subr.bf16.mxu0 %v1216_v27  ;;  %1061 = vmatprep.subr.bf16.mxu1 %v1216_v27  ;;  %v1220_v23 = vld [vmem:[%s1752_s1 + $0x40] sm:$0xff]  }
  0x20   : > { %v1437_v42 = vsel %vm246_vm0, %v284_v34, %v285_v35  ;;  %v178_v47 = vunpack.c.l.bf16 %v1399_v5  ;;  %v243_v48 = vrot.slane %v1394_v3, 1  ;;  %v1446_v52 = vsel %vm246_vm0, %v292_v36, %v293_v24 }
  0x21   : > { %v1111_v25 = vpack.i.bf16 %v1437_v42, %v1429_v39  ;;  %v1451_v53 = vsel %vm221_vm1, %v231_v37, %v232_v41  ;;  %v244_v54 = vrot.slane %v200_v4, 1  ;;  %v1465_v0 = vmax.f32 %v177_v44, 0.0  ;;  %1009 = vmatpush3.bf16.msra.mxu0 %v1217_v33  ;;  %1069 = vmatpush3.bf16.msra.mxu1 %v1217_v33  ;;  %v1221_v33 = vld [vmem:[%s1752_s1] sm:$0xff]  }
  0x22   : > { %v1116_v63 = vpack.i.bf16 %v1451_v53, %v1433_v40  ;;  %v198_v1 = vmax.f32 %v178_v47, 0.0  ;;  %1010 = vmatprep.subr.bf16.mxu0 %v1218_v51  ;;  %v273_v34 = vrot.slane %v1403_v15, 1  ;;  %v274_v35 = vrot.slane %v1407_v18, 1  ;;  %1062 = vmatprep.subr.bf16.mxu1 %v1218_v51 }
  0x23   : > { %1112 = vrot.lane.b32.xlu0 %v1111_v25, %s1233_s6  ;;  %v1474_v4 = vsel %vm221_vm1, %v243_v48, %v244_v54  ;;  %v240_v27 = vrot.slane %v1465_v0, 1  ;;  %v265_v30 = vrot.slane %v1465_v0, 2  ;;  %v289_v36 = vrot.slane %v1409_v19, 1  ;;  %v1495_v54 = vld [vmem:[%s1279_s24 + $0x2c] sm:$0x1] }
  0x24   : > { %1117 = vrot.lane.b32.xlu1 %v1116_v63, %s1234_s7  ;;  %v241_v29 = vrot.slane %v198_v1, 1  ;;  %v266_v31 = vrot.slane %v198_v1, 2  ;;  %v290_v37 = vrot.slane %v1415_v28, 1  ;;  %v173_v48 = vunpack.c.l.bf16 %v1454_v55 }
  0x25   : > { %v174_v25 = vunpack.c.l.bf16 %v1457_v56  ;;  %1011 = vmatpush3.bf16.msra.mxu0 %v1219_v2  ;;  %v1126_v51 = vpack.i.bf16 %v1409_v19, %v1403_v15  ;;  %v1522_v59 = vsel %vm221_vm1, %v273_v34, %v274_v35  ;;  %1070 = vmatpush3.bf16.msra.mxu1 %v1219_v2  ;;  %v1529_v19 = vld [vmem:[%s1752_s1 + $0x88] sm:$0xff]   ;;  %v818_v7 = vrot.slane %v171_v10, 1 }
  0x26   : > { %v1487_v24 = vsel %vm221_vm1, %v240_v27, %v241_v29  ;;  %v1490_v41 = vsel %vm246_vm0, %v265_v30, %v266_v31  ;;  %v1508_v1 = vmax.f32 %v173_v48, 0.0  ;;  %1012 = vmatprep.subr.bf16.mxu0 %v1220_v23  ;;  %v1141_v29 = vpack.i.bf16 %v1403_v15, %v1394_v3  ;;  %1063 = vmatprep.subr.bf16.mxu1 %v1220_v23 }
  0x27   : > { %v1499_v18 = vpack.i.bf16 %v1474_v4, %v1487_v24  ;;  %v1131_v28 = vpack.i.bf16 %v1429_v39, %v1490_v41  ;;  %v194_v27 = vmax.f32 %v174_v25, 0.0  ;;  %v175_v30 = vunpack.c.h.bf16 %v1454_v55 }
  0x28   : > { %v176_v31 = vunpack.c.l.bf16 %v1495_v54  ;;  %v291_v50 = vsel %vm221_vm1, %v289_v36, %v290_v37  ;;  %v259_v58 = vrot.slane %v1508_v1, 2  ;;  %v819_v8 = vrot.slane %v172_v17, 1 }
  0x29   : > { %1122 = vrot.lane.b32.xlu0 %v1499_v18, %s1233_s6  ;;  %1132 = vrot.lane.b32.xlu1 %v1131_v28, %s1232_s29  ;;  %v260_v57 = vrot.slane %v194_v27, 2  ;;  %v1533_v15 = vmax.f32 %v175_v30, 0.0  ;;  %v1136_v2 = vpack.i.bf16 %v291_v50, %v1522_v59  ;;  %v1161_v28 = vpack.i.bf16 %v1361_v46, %v1358_v45 }
  0x2a   : > { %1013 = vmatpush3.bf16.msra.mxu0 %v1221_v33  ;;  %v196_v34 = vmax.f32 %v176_v31, 0.0  ;;  %1071 = vmatpush3.bf16.msra.mxu1 %v1221_v33  ;;  %v234_v50 = vrot.slane %v1508_v1, 1  ;;  %v824_v6 = vrot.slane %v175_v30, 1  ;;  %v825_v10 = vrot.slane %v176_v31, 1 }
  0x2b   : > { %v1541_v23 = vsel %vm246_vm0, %v259_v58, %v260_v57  ;;  %v262_v35 = vrot.slane %v1533_v15, 2  ;;  %1044 = vmatprep.subr.bf16.mxu1 %v1529_v19  ;;  %v235_v58 = vrot.slane %v194_v27, 1  ;;  %v237_v33 = vrot.slane %v1533_v15, 1 }
  0x2c   : > { %v263_v36 = vrot.slane %v196_v34, 2  ;;  %v1146_v37 = vpack.i.bf16 %v1541_v23, %v1361_v46  ;;  %v820_v12 = vsel %vm221_vm1, %v818_v7, %v819_v8  ;;  %v833_v49 = vrot.slane %v181_v61, 1 }
  0x2d   : > { %1127 = vrot.lane.b32.xlu0 %v1126_v51, %s1232_s29  ;;  %1142 = vrot.lane.b32.xlu1 %v1141_v29, %s1234_s7  ;;  %v238_v51 = vrot.slane %v196_v34, 1  ;;  %v506_v34 = vpack.c.bf16 %v1429_v39, %v1490_v41  ;;  %v834_v5 = vrot.slane %v182_v62, 1  ;;  %v1757_v56 = vunpack.c.l.bf16 %v1346_v38 }
  0x2e   : > { %v1553_v57 = vsel %vm246_vm0, %v262_v35, %v263_v36  ;;  %v1565_v35 = vsel %vm221_vm1, %v234_v50, %v235_v58  ;;  %v1186_v50 = vpack.i.bf16 %v1394_v3, %v1465_v0  ;;  %v1201_v58 = vpack.i.bf16 %v1465_v0, %v1533_v15 }
  0x2f   : > { %v503_v29 = vpack.c.bf16 %v1553_v57, %v1541_v23  ;;  %v1568_v27 = vsel %vm221_vm1, %v237_v33, %v238_v51  ;;  %v815_v33 = vrot.slane %v169_v9, 1  ;;  %v816_v51 = vrot.slane %v170_v16, 1 }
  0x30   : > { %v1166_v36 = vpack.i.bf16 %v1568_v27, %v1565_v35  ;;  %v822_v9 = vrot.slane %v174_v25, 1  ;;  %v828_v16 = vrot.slane %v178_v47, 1  ;;  %v1756_v47 = vunpack.c.l.bf16 %v1336_v32 }
  0x31   : > { %1137 = vrot.lane.b32.xlu0 %v1136_v2, %s1234_s7  ;;  %1152 = vrot.lane.b32.xlu1 %v1116_v63, %s1233_s6  ;;  %v1156_v63 = vpack.i.bf16 %v1533_v15, %v1508_v1  ;;  %v1171_v2 = vpack.i.bf16 %v1508_v1, %v1313_v21  ;;  %v835_v25 = vsel %vm221_vm1, %v833_v49, %v834_v5 }
  0x32   : > { %v830_v55 = vrot.slane %v1756_v47, 1 }
  0x35   : > { %1147 = vrot.lane.b32.xlu0 %v1146_v37, %s1233_s6  ;;  %1162 = vrot.lane.b32.xlu1 %v1161_v28, %s1232_s29  ;;  %v1176_v37 = vpack.i.bf16 %v1490_v41, %v1553_v57  ;;  %v1191_v28 = vpack.i.bf16 %v1553_v57, %v1541_v23 }
  0x39   : > { %1157 = vrot.lane.b32.xlu0 %v1156_v63, %s1232_s29  ;;  %1172 = vrot.lane.b32.xlu1 %v1171_v2, %s1234_s7  ;;  %v812_v63 = vrot.slane %v167_v13, 1  ;;  %v813_v2 = vrot.slane %v168_v14, 1  ;;  %v827_v14 = vrot.slane %v177_v44, 1  ;;  %v826_v44 = vsel %vm221_vm1, %v824_v6, %v825_v10 }
  0x3b   : > { %v814_v11 = vsel %vm221_vm1, %v812_v63, %v813_v2  ;;  %v829_v17 = vsel %vm221_vm1, %v827_v14, %v828_v16 }
  0x3d   : > { %1167 = vrot.lane.b32.xlu0 %v1166_v36, %s1234_s7  ;;  %1182 = vrot.lane.b32.xlu1 %v1166_v36, %s1233_s6  ;;  %v817_v36 = vsel %vm221_vm1, %v815_v33, %v816_v51 }
  0x41   : > { %1177 = vrot.lane.b32.xlu0 %v1176_v37, %s1233_s6  ;;  %1192 = vrot.lane.b32.xlu1 %v1191_v28, %s1232_s29  ;;  %v821_v37 = vrot.slane %v173_v48, 1  ;;  %v831_v48 = vrot.slane %v1757_v56, 1 }
  0x43   : > { %v823_v13 = vsel %vm221_vm1, %v821_v37, %v822_v9  ;;  %v832_v43 = vsel %vm221_vm1, %v830_v55, %v831_v48 }
  0x45   : > { %1187 = vrot.lane.b32.xlu0 %v1186_v50, %s1232_s29  ;;  %1202 = vrot.lane.b32.xlu1 %v1201_v58, %s1234_s7 }
  0x49   : > { %1197 = vrot.lane.b32.xlu0 %v1499_v18, %s1234_s7  ;;  %838 = vrot.lane.b32.xlu1 %v817_v36, %s1232_s29 }
  0x4d   : > { %836 = vrot.lane.b32.xlu0 %v814_v11, %s1232_s29  ;;  %842 = vrot.lane.b32.xlu1 %v823_v13, %s1232_s29 }
  0x51   : > { %840 = vrot.lane.b32.xlu0 %v820_v12, %s1232_s29  ;;  %846 = vrot.lane.b32.xlu1 %v829_v17, %s1232_s29 }
  0x55   : > { %844 = vrot.lane.b32.xlu0 %v826_v44, %s1232_s29  ;;  %850 = vrot.lane.b32.xlu1 %v835_v25, %s1232_s29 }
  0x59   : > { %848 = vrot.lane.b32.xlu0 %v832_v43, %s1232_s29 }
  0x88   : > { %v1088_v61 = vpop.permute.xlu1 %1087 }
  0x89   : > { %v1090_v63 = vunpack.i.h.bf16 %v1088_v61  ;;  %v1089_v2 = vunpack.i.l.bf16 %v1088_v61 }
  0x8c   : > { %v1098_v62 = vpop.permute.xlu0 %1097  ;;  %v1093_v54 = vpop.permute.xlu1 %1092 }
  0x8d   : > { %v1100_v18 = vunpack.i.h.bf16 %v1098_v62  ;;  %v1099_v30 = vunpack.i.l.bf16 %v1098_v62  ;;  %v1095_v36 = vunpack.i.h.bf16 %v1093_v54  ;;  %v1094_v37 = vunpack.i.l.bf16 %v1093_v54 }
  0x8f   : > { %v474_v11 = vsel %vm447_vm2, %v1383_v60, %v1099_v30 }
  0x90   : > { %v1103_v32 = vpop.permute.xlu0 %1102  ;;  %v1108_v31 = vpop.permute.xlu1 %1107  ;;  %v482_v16 = vsel %vm456_vm3, %v474_v11, %v1089_v2 }
  0x91   : > { %v1105_v28 = vunpack.i.h.bf16 %v1103_v32  ;;  %v1104_v38 = vunpack.i.l.bf16 %v1103_v32  ;;  %v1110_v50 = vunpack.i.h.bf16 %v1108_v31  ;;  %v1109_v58 = vunpack.i.l.bf16 %v1108_v31 }
  0x93   : > { %v449_v33 = vsel %vm447_vm2, %v1317_v22, %v1105_v28  ;;  %v448_v51 = vsel %vm447_vm2, %v1329_v26, %v1104_v38  ;;  %v475_v22 = vsel %vm447_vm2, %v1433_v40, %v1100_v18 }
  0x94   : > { %v457_v9 = vsel %vm456_vm3, %v448_v51, %v1109_v58  ;;  %v458_v7 = vsel %vm456_vm3, %v449_v33, %v1110_v50  ;;  %v483_v6 = vsel %vm456_vm3, %v475_v22, %v1090_v63 }
  0x95   : > { %v1113_v8 = vpop.permute.xlu0 %1112  ;;  %v466_v10 = vsel %vm465_vm4, %v457_v9, %v1094_v37  ;;  %v467_v12 = vsel %vm465_vm4, %v458_v7, %v1095_v36 }
  0x96   : > { %v1118_v13 = vpop.permute.xlu1 %1117  ;;  %v498_v47 = vpack.c.bf16 %v467_v12, %v466_v10  ;;  %v1115_v56 = vunpack.i.h.bf16 %v1113_v8  ;;  %v1114_v48 = vunpack.i.l.bf16 %v1113_v8 }
  0x97   : > { %v1120_v14 = vunpack.i.h.bf16 %v1118_v13  ;;  %v1119_v26 = vunpack.i.l.bf16 %v1118_v13 }
  0x98   : > { %v480_v58 = vsel %vm447_vm2, %v1474_v4, %v1114_v48  ;;  %v481_v33 = vsel %vm447_vm2, %v1522_v59, %v1115_v56 }
  0x99   : > { %v490_v17 = vsel %vm465_vm4, %v482_v16, %v1119_v26  ;;  %v491_v49 = vsel %vm465_vm4, %v483_v6, %v1120_v14  ;;  %v1223_v26 = vld [vmem:[%s1752_s1 + $0x80] sm:$0xff]  }
  0x9a   : > { %v499_v5 = vpack.c.bf16 %v491_v49, %v490_v17  ;;  %v1758_v17 = vpack.c.bf16 %v1361_v46, %v1358_v45 }
  0x9b   : > { %v1123_v60 = vpop.permute.xlu0 %1122  ;;  %v1133_v44 = vpop.permute.xlu1 %1132 }
  0x9c   : > { %v1125_v40 = vunpack.i.h.bf16 %v1123_v60  ;;  %v1124_v55 = vunpack.i.l.bf16 %v1123_v60  ;;  %698 = vmatprep.mubr.bf16.mxu0 %v499_v5  ;;  %v1135_v54 = vunpack.i.h.bf16 %v1133_v44  ;;  %v1134_v18 = vunpack.i.l.bf16 %v1133_v44 }
  0x9d   : > { %699 = vmatmul.mubr.bf16.vlgmr.msra.gmra.mxu0 %v498_v47 }
  0x9e   : > { %v455_v61 = vsel %vm447_vm2, %v1394_v3, %v1125_v40  ;;  %v454_v62 = vsel %vm447_vm2, %v1465_v0, %v1124_v55 }
  0x9f   : > { %v1128_v25 = vpop.permute.xlu0 %1127  ;;  %v1143_v43 = vpop.permute.xlu1 %1142  ;;  %v463_v51 = vsel %vm456_vm3, %v454_v62, %v1134_v18  ;;  %v464_v3 = vsel %vm456_vm3, %v455_v61, %v1135_v54 }
  0xa0   : > { %v1130_v30 = vunpack.i.h.bf16 %v1128_v25  ;;  %v1129_v32 = vunpack.i.l.bf16 %v1128_v25  ;;  %v1145_v31 = vunpack.i.h.bf16 %v1143_v43  ;;  %v1144_v28 = vunpack.i.l.bf16 %v1143_v43 }
  0xa2   : > { %v488_v2 = vsel %vm456_vm3, %v480_v58, %v1129_v32  ;;  %v489_v36 = vsel %vm456_vm3, %v481_v33, %v1130_v30  ;;  %v472_v37 = vsel %vm465_vm4, %v463_v51, %v1144_v28  ;;  %v473_v9 = vsel %vm465_vm4, %v464_v3, %v1145_v31 }
  0xa3   : > { %v1138_v38 = vpop.permute.xlu0 %1137  ;;  %v1153_v50 = vpop.permute.xlu1 %1152  ;;  %v507_v14 = vpack.c.bf16 %v473_v9, %v472_v37 }
  0xa4   : > { %v1140_v63 = vunpack.i.h.bf16 %v1138_v38  ;;  %v1139_v0 = vunpack.i.l.bf16 %v1138_v38  ;;  %v1155_v22 = vunpack.i.h.bf16 %v1153_v50  ;;  %v1154_v13 = vunpack.i.l.bf16 %v1153_v50 }
  0xa6   : > { %v496_v7 = vsel %vm465_vm4, %v488_v2, %v1139_v0  ;;  %v497_v4 = vsel %vm465_vm4, %v489_v36, %v1140_v63  ;;  %v451_v49 = vsel %vm447_vm2, %v1313_v21, %v1155_v22  ;;  %v450_v5 = vsel %vm447_vm2, %v1309_v20, %v1154_v13 }
  0xa7   : > { %v1148_v8 = vpop.permute.xlu0 %1147  ;;  %v1163_v59 = vpop.permute.xlu1 %1162  ;;  %v508_v11 = vpack.c.bf16 %v497_v4, %v496_v7  ;;  %v1759_v2 = vpack.c.bf16 %v1446_v52, %v1437_v42 }
  0xa8   : > { %v1150_v16 = vunpack.i.h.bf16 %v1148_v8  ;;  %v1149_v6 = vunpack.i.l.bf16 %v1148_v8  ;;  %v1165_v60 = vunpack.i.h.bf16 %v1163_v59  ;;  %v1164_v44 = vunpack.i.l.bf16 %v1163_v59 }
  0xa9   : > { %722 = vmatprep.mubr.bf16.mxu1 %v508_v11 }
  0xaa   : > { %723 = vmatmul.mubr.bf16.vlgmr.msra.gmra.mxu1 %v507_v14  ;;  %v476_v45 = vsel %vm447_vm2, %v1451_v53, %v1149_v6  ;;  %v459_v21 = vsel %vm456_vm3, %v450_v5, %v1164_v44  ;;  %v460_v20 = vsel %vm456_vm3, %v451_v49, %v1165_v60 }
  0xab   : > { %v1158_v10 = vpop.permute.xlu0 %1157  ;;  %1045 = vmatpush3.bf16.msra.mxu1 %v1529_v19  ;;  %v1173_v12 = vpop.permute.xlu1 %1172  ;;  %1048 = vmatprep.mubr.msk.bf16.mxu1 %vm447_vm2, %v1758_v17  ;;  %v477_v19 = vsel %vm447_vm2, %v1565_v35, %v1150_v16 }
  0xac   : > { %1046 = vmatprep.subr.bf16.mxu1 %v1223_v26  ;;  %v1160_v47 = vunpack.i.h.bf16 %v1158_v10  ;;  %v1159_v40 = vunpack.i.l.bf16 %v1158_v10  ;;  %v1175_v55 = vunpack.i.h.bf16 %v1173_v12  ;;  %v1174_v56 = vunpack.i.l.bf16 %v1173_v12 }
  0xae   : > { %v484_v61 = vsel %vm456_vm3, %v476_v45, %v1159_v40  ;;  %v485_v62 = vsel %vm456_vm3, %v477_v19, %v1160_v47  ;;  %v468_v54 = vsel %vm465_vm4, %v459_v21, %v1174_v56  ;;  %v469_v35 = vsel %vm465_vm4, %v460_v20, %v1175_v55 }
  0xaf   : > { %v1168_v46 = vpop.permute.xlu0 %1167  ;;  %1047 = vmatpush3.bf16.msra.mxu1 %v1223_v26  ;;  %v1183_v48 = vpop.permute.xlu1 %1182  ;;  %v501_v50 = vpack.c.bf16 %v469_v35, %v468_v54 }
  0xb0   : > { %v1170_v25 = vunpack.i.h.bf16 %v1168_v46  ;;  %v1169_v43 = vunpack.i.l.bf16 %v1168_v46  ;;  %v1185_v28 = vunpack.i.h.bf16 %v1183_v48  ;;  %v1184_v38 = vunpack.i.l.bf16 %v1183_v48 }
  0xb2   : > { %1049 = vmatmul.mubr.msk.bf16.vlgmr.msra.gmra.mxu1 %vm447_vm2, %v503_v29  ;;  %v492_v53 = vsel %vm465_vm4, %v484_v61, %v1169_v43  ;;  %v493_v18 = vsel %vm465_vm4, %v485_v62, %v1170_v25  ;;  %v453_v33 = vsel %vm447_vm2, %v1533_v15, %v1185_v28  ;;  %v452_v51 = vsel %vm447_vm2, %v1508_v1, %v1184_v38 }
  0xb3   : > { %v1178_v30 = vpop.permute.xlu0 %1177  ;;  %v1193_v32 = vpop.permute.xlu1 %1192  ;;  %v502_v31 = vpack.c.bf16 %v493_v18, %v492_v53  ;;  %1052 = vmatprep.mubr.msk.bf16.mxu1 %vm447_vm2, %v506_v34 }
  0xb4   : > { %v1180_v23 = vunpack.i.h.bf16 %v1178_v30  ;;  %v1179_v57 = vunpack.i.l.bf16 %v1178_v30  ;;  %v1195_v3 = vunpack.i.h.bf16 %v1193_v32  ;;  %v1194_v63 = vunpack.i.l.bf16 %v1193_v32 }
  0xb5   : > { %706 = vmatprep.mubr.bf16.mxu0 %v502_v31 }
  0xb6   : > { %707 = vmatmul.mubr.bf16.gmra.mxu0 %v501_v50  ;;  %v479_v36 = vsel %vm447_vm2, %v1487_v24, %v1180_v23  ;;  %v478_v15 = vsel %vm447_vm2, %v1568_v27, %v1179_v57  ;;  %v461_v1 = vsel %vm456_vm3, %v452_v51, %v1194_v63  ;;  %v462_v9 = vsel %vm456_vm3, %v453_v33, %v1195_v3 }
  0xb7   : > { %v1188_v29 = vpop.permute.xlu0 %1187  ;;  %v1203_v58 = vpop.permute.xlu1 %1202 }
  0xb8   : > { %v1190_v39 = vunpack.i.h.bf16 %v1188_v29  ;;  %v1189_v41 = vunpack.i.l.bf16 %v1188_v29  ;;  %v1205_v34 = vunpack.i.h.bf16 %v1203_v58  ;;  %v1204_v0 = vunpack.i.l.bf16 %v1203_v58 }
  0xba   : > { %1053 = vmatmul.mubr.msk.bf16.gmra.mxu1 %vm447_vm2, %v1759_v2  ;;  %v486_v8 = vsel %vm456_vm3, %v478_v15, %v1189_v41  ;;  %v487_v59 = vsel %vm456_vm3, %v479_v36, %v1190_v39  ;;  %v470_v42 = vsel %vm465_vm4, %v461_v1, %v1204_v0  ;;  %v471_v52 = vsel %vm465_vm4, %v462_v9, %v1205_v34 }
  0xbb   : > { %v1198_v37 = vpop.permute.xlu0 %1197  ;;  %v504_v22 = vpack.c.bf16 %v471_v52, %v470_v42  ;;  %v839_v20 = vpop.permute.xlu1 %838 }
  0xbc   : > { %v1200_v7 = vunpack.i.h.bf16 %v1198_v37  ;;  %v1199_v4 = vunpack.i.l.bf16 %v1198_v37 }
  0xbe   : > { %v494_v24 = vsel %vm465_vm4, %v486_v8, %v1199_v4  ;;  %v495_v11 = vsel %vm465_vm4, %v487_v59, %v1200_v7 }
  0xbf   : > { %v505_v27 = vpack.c.bf16 %v495_v11, %v494_v24  ;;  %v837_v44 = vpop.permute.xlu0 %836  ;;  %v843_v32 = vpop.permute.xlu1 %842 }
  0xc1   : > { %714 = vmatprep.mubr.bf16.mxu0 %v505_v27 }
  0xc2   : > { %715 = vmatmul.mubr.bf16.gmra.mxu0 %v504_v22 }
  0xc3   : > { %v841_v35 = vpop.permute.xlu0 %840  ;;  %v847_v0 = vpop.permute.xlu1 %846 }
  0xc7   : > { %v845_v29 = vpop.permute.xlu0 %844  ;;  %v851_v7 = vpop.permute.xlu1 %850 }
  0xcb   : > { %v849_v15 = vpop.permute.xlu0 %848 }
 0x15d   : > { %v1014_v13 = vpop.f32.mrf.mxu0 }
 0x15f   : > { %v1015_v26 = vpop.f32.mrf.mxu0 }
 0x160   : > { %v1016_v49 = vadd.f32 %v1015_v26, %v1014_v13 }
 0x161   : > { %v1017_v10 = vpop.f32.mrf.mxu0 }
 0x163   : > { %v1018_v5 = vpop.f32.mrf.mxu0 }
 0x164   : > { %v1019_v56 = vadd.f32 %v1018_v5, %v1017_v10 }
 0x16a   : > { %v1032_v14 = vpop.f32.mrf.mxu1 }
 0x16c   : > { %v1033_v16 = vpop.f32.mrf.mxu1 }
 0x16d   : > { %v1034_v41 = vadd.f32 %v1033_v16, %v1032_v14 }
 0x16e   : > { %v1035_v6 = vpop.f32.mrf.mxu1 }
 0x170   : > { %v1036_v12 = vpop.f32.mrf.mxu1 }
 0x171   : > { %v1037_v37 = vadd.f32 %v1036_v12, %v1035_v6 }
 0x172   : > { %v1050_v17 = vpop.f32.mrf.mxu1 }
 0x174   : > { %v765_v60 = vpop.f32.mrf.mxu1 }
 0x175   : > { %v766_v47 = vadd.f32 %v1016_v49, %v765_v60 }
 0x176   : > { %v1020_v40 = vpop.f32.mrf.mxu0  ;;  %v1051_v55 = vpop.f32.mrf.mxu1 }
 0x177   : > { %v860_v19 = vsel %vm456_vm3, %v766_v47, %v837_v44 }
 0x178   : > { %v1021_v45 = vpop.f32.mrf.mxu0  ;;  %v768_v46 = vpop.f32.mrf.mxu1  ;;  %868 = vxpose.xlu0.b32.start [1/8] (short) (narrow) %v860_v19, 96 }
 0x179   : > { %v1022_v48 = vadd.f32 %v1021_v45, %v1020_v40  ;;  %v769_v21 = vadd.f32 %v1019_v56, %v768_v46 }
 0x17a   : > { %v1023_v25 = vpop.f32.mrf.mxu0  ;;  %v1054_v30 = vpop.f32.mrf.mxu1 }
 0x17b   : > { %v774_v43 = vadd.f32 %v1050_v17, %v1022_v48  ;;  %v861_v61 = vsel %vm456_vm3, %v769_v21, %v839_v20  ;;  %v790_v2 = vadd.f32 %v1054_v30, %v1034_v41 }
 0x17c   : > { %v1024_v62 = vpop.f32.mrf.mxu0  ;;  %869 = vxpose.xlu0.b32.cont [2/8] (short) (narrow) %v861_v61, 96  ;;  %v781_v38 = vpop.f32.mrf.mxu1 }
 0x17d   : > { %v1025_v54 = vadd.f32 %v1024_v62, %v1023_v25  ;;  %v862_v18 = vsel %vm456_vm3, %v774_v43, %v841_v35  ;;  %v866_v9 = vsel %vm456_vm3, %v790_v2, %v849_v15 }
 0x17e   : > { %v1055_v33 = vpop.f32.mrf.mxu1 }
 0x17f   : > { %v777_v53 = vadd.f32 %v1051_v55, %v1025_v54  ;;  %v793_v1 = vadd.f32 %v1055_v33, %v1037_v37 }
 0x180   : > { %870 = vxpose.xlu0.b32.cont [3/8] (short) (narrow) %v862_v18, 96  ;;  %v784_v39 = vpop.f32.mrf.mxu1 }
 0x181   : > { %v863_v28 = vsel %vm456_vm3, %v777_v53, %v843_v32  ;;  %v867_v4 = vsel %vm456_vm3, %v793_v1, %v851_v7 }
 0x182   : > { %v1026_v31 = vpop.f32.mrf.mxu0 }
 0x184   : > { %v1027_v50 = vpop.f32.mrf.mxu0  ;;  %871 = vxpose.xlu0.b32.cont [4/8] (short) (narrow) %v863_v28, 96 }
 0x185   : > { %v1028_v23 = vadd.f32 %v1027_v50, %v1026_v31 }
 0x186   : > { %v1029_v57 = vpop.f32.mrf.mxu0 }
 0x187   : > { %v782_v58 = vadd.f32 %v1028_v23, %v781_v38 }
 0x188   : > { %v1030_v51 = vpop.f32.mrf.mxu0 }
 0x189   : > { %v1031_v3 = vadd.f32 %v1030_v51, %v1029_v57  ;;  %v864_v63 = vsel %vm456_vm3, %v782_v58, %v845_v29 }
 0x18a   : > { %872 = vxpose.xlu0.b32.cont [5/8] (short) (narrow) %v864_v63, 96 }
 0x18b   : > { %v785_v34 = vadd.f32 %v1031_v3, %v784_v39 }
 0x18d   : > { %v865_v36 = vsel %vm456_vm3, %v785_v34, %v847_v0 }
 0x18e   : > { %873 = vxpose.xlu0.b32.cont [6/8] (short) (narrow) %v865_v36, 96 }
 0x192   : > { %874 = vxpose.xlu0.b32.cont [7/8] (short) (narrow) %v866_v9, 96 }
 0x196   : > { %875 = vxpose.xlu0.b32.end [8/8] (short) (narrow) %v867_v4, 96 }
 0x1f6   : > { %v884_v8 = vpop.trf.xlu0 }
 0x1f7   : > { %900 = vst.msk [vmem:[%s143_s3] sm:$0xff] %vm456_vm3, %v884_v8 }
 0x1fa   : > { %v885_v59 = vpop.trf.xlu0 }
 0x1fb   : > { %901 = vst.msk [vmem:[%s143_s3 + $0x8] sm:$0xff] %vm456_vm3, %v885_v59 }
 0x1fe   : > { %v886_v42 = vpop.trf.xlu0 }
 0x1ff   : > { %902 = vst.msk [vmem:[%s143_s3 + $0x10] sm:$0xff] %vm456_vm3, %v886_v42 }
 0x202   : > { %v887_v52 = vpop.trf.xlu0 }
 0x203   : > { %903 = vst.msk [vmem:[%s143_s3 + $0x18] sm:$0xff] %vm456_vm3, %v887_v52 }
 0x206   : > { %v888_v24 = vpop.trf.xlu0 }
 0x207   : > { %904 = vst.msk [vmem:[%s143_s3 + $0x20] sm:$0xff] %vm456_vm3, %v888_v24 }
 0x20a   : > { %v889_v11 = vpop.trf.xlu0 }
 0x20b   : > { %905 = vst.msk [vmem:[%s143_s3 + $0x28] sm:$0xff] %vm456_vm3, %v889_v11 }
 0x20e   : > { %v890_v27 = vpop.trf.xlu0 }
 0x20f   : > { %906 = vst.msk [vmem:[%s143_s3 + $0x30] sm:$0xff] %vm456_vm3, %v890_v27 }
 0x212   : > { %v891_v22 = vpop.trf.xlu0 }
 0x213   : > { %907 = vst.msk [vmem:[%s143_s3 + $0x38] sm:$0xff] %vm456_vm3, %v891_v22 }
 0x216   : > { %v892_v13 = vpop.trf.xlu0 }
 0x217   : > { %908 = vst.msk [vmem:[%s143_s3 + $0x40] sm:$0xff] %vm456_vm3, %v892_v13 }
 0x21a   : > { %v893_v14 = vpop.trf.xlu0 }
 0x21b   : > { %909 = vst.msk [vmem:[%s143_s3 + $0x48] sm:$0xff] %vm456_vm3, %v893_v14 }
 0x21e   : > { %v894_v26 = vpop.trf.xlu0 }
 0x21f   : > { %910 = vst.msk [vmem:[%s143_s3 + $0x50] sm:$0xff] %vm456_vm3, %v894_v26 }
 0x222   : > { %v895_v16 = vpop.trf.xlu0 }
 0x223   : > { %911 = vst.msk [vmem:[%s143_s3 + $0x58] sm:$0xff] %vm456_vm3, %v895_v16 }
 0x224 PF: > { %s12_s9 = sadd.s32 1, %s1230_s9  }
 0x225   : > { %p9_p4 = scmp.ge.s32.totalorder %s12_s9, 4  }
 0x227   :  { %11 = sbr.rel (!%p9_p4) target bundleno = 1 (0x1), region = 58 }

</bundles_post_ra>
